<compile_context>
chip_gen: v5e
topology: v5e:2x2
jax: 0.10.0
libtpu: 0.0.40
codegen_flags: <defaults>
</compile_context>

<pallas_src>
import functools

import jax
import jax.numpy as jnp
from jax.experimental import pallas as pl
from jax.experimental.pallas import tpu as pltpu


def _round_up(x, m):
    return ((x + m - 1) // m) * m


def _similarity_kernel(num_classes,
                       lvec_ref, rvec_ref,
                       wh_m_ref, wh_a_ref, wh_b_ref,
                       wp_w_ref, wp_b_ref,
                       out_ref):
    l = lvec_ref[...]                              # (bB, D) operand dtype
    r = rvec_ref[...]                              # (bB, D)

    # Distance features (elementwise, VPU).
    mult_dist = l * r                              # (bB, D)
    abs_dist = jnp.abs(l - r)                      # (bB, D)

    # hidden = sigmoid(concat(mult, abs) @ Wh^T + bh); concat folded into two
    # MXU matmuls + add.  Accumulate in f32.
    h = (jnp.dot(mult_dist, wh_m_ref[...], preferred_element_type=jnp.float32)
         + jnp.dot(abs_dist, wh_a_ref[...], preferred_element_type=jnp.float32)
         + wh_b_ref[...])                          # (bB, H) f32
    h = jax.nn.sigmoid(h)

    # Logits over the lane-padded (128-wide) class axis; padded lanes carry
    # bias -1e30 and zero weights, so they never affect max or lse.
    logits = (jnp.dot(h.astype(wp_w_ref.dtype), wp_w_ref[...],
                      preferred_element_type=jnp.float32)
              + wp_b_ref[...])                     # (bB, C_pad) f32

    # Numerically-stable log_softmax along lanes (full-vreg reductions).
    m = jnp.max(logits, axis=1, keepdims=True)
    shifted = logits - m
    lse = jnp.log(jnp.sum(jnp.exp(shifted), axis=1, keepdims=True))
    log_probs = shifted - lse                      # (bB, C_pad) f32

    # Store only the real classes -> ~16x less HBM writeback than the padded
    # slab (masked lane store, fine since compute has huge slack).
    out_ref[...] = log_probs[:, :num_classes]


def prepare_similarity_params(wh_weight, wh_bias, wp_weight, wp_bias,
                              operand_dtype=jnp.bfloat16):
    """One-time weight preprocessing (hoisted out of the per-call path).

    wh_weight : (hidden_dim, 2*mem_dim)   PyTorch nn.Linear layout (out, in)
    wh_bias   : (hidden_dim,)
    wp_weight : (num_classes, hidden_dim)
    wp_bias   : (num_classes,)
    """
    H, D2 = wh_weight.shape
    D = D2 // 2
    C = wp_weight.shape[0]
    C_pad = _round_up(max(C, 128), 128)            # lane-dense class axis for compute

    wh_t = jnp.asarray(wh_weight, jnp.float32).T   # (2D, H)
    wh_m = wh_t[:D, :].astype(operand_dtype)       # (D, H)  acts on mult_dist
    wh_a = wh_t[D:, :].astype(operand_dtype)       # (D, H)  acts on abs_dist
    bh = jnp.asarray(wh_bias, jnp.float32).reshape(1, H)

    wp_t = (jnp.zeros((H, C_pad), jnp.float32)
            .at[:, :C].set(jnp.asarray(wp_weight, jnp.float32).T)
            .astype(operand_dtype))
    bp = jnp.full((1, C_pad), -1e30, jnp.float32).at[0, :C].set(
        jnp.asarray(wp_bias, jnp.float32))

    return {
        "wh_m": wh_m, "wh_a": wh_a, "bh": bh,
        "wp_t": wp_t, "bp": bp,
        "num_classes": C,
        "operand_dtype": operand_dtype,
    }


@functools.partial(jax.jit, static_argnames=("num_classes", "block_b"))
def _similarity_call(lvec, rvec, wh_m, wh_a, bh, wp_t, bp,
                     *, num_classes, block_b):
    B, D = lvec.shape
    H = wh_m.shape[1]
    C_pad = wp_t.shape[1]

    # Batch block: big enough to amortize the ~0.35us/step grid overhead,
    # small enough to give >=2 grid steps (v7x: 2 TensorCores share the
    # "parallel" axis).  Blocks are tiny in VMEM at these feature sizes.
    bB = min(block_b, _round_up(pl.cdiv(B, 2), 8))
    if bB >= B:
        bB = B                                     # single block == full array dim
    grid = (pl.cdiv(B, bB),)                       # ragged last block masked by Pallas

    # lvec/rvec/out blocked on the batch axis; weights/biases VMEM-resident.
    batched_in = pl.BlockSpec((bB, D), lambda i: (i, 0))
    out_spec = pl.BlockSpec((bB, num_classes), lambda i: (i, 0))
    resident = lambda shape: pl.BlockSpec(shape, lambda i: (0, 0))

    out = pl.pallas_call(
        functools.partial(_similarity_kernel, num_classes),
        out_shape=jax.ShapeDtypeStruct((B, num_classes), jnp.float32),
        grid=grid,
        in_specs=[
            batched_in,                 # lvec
            batched_in,                 # rvec
            resident((D, H)),           # wh_m
            resident((D, H)),           # wh_a
            resident((1, H)),           # bh
            resident((H, C_pad)),       # wp_t (lane-padded, zeros in pads)
            resident((1, C_pad)),       # bp   (lane-padded with -1e30)
        ],
        out_specs=out_spec,
        compiler_params=pltpu.CompilerParams(
            dimension_semantics=("parallel",),
            vmem_limit_bytes=64 * 1024 * 1024),
    )(lvec, rvec, wh_m, wh_a, bh, wp_t, bp)

    return out                                     # (B, num_classes) f32, no slicing


def similarity_forward(lvec, rvec, params, *, block_b=8192):
    """Forward pass. `params` comes from prepare_similarity_params().

    Inputs are cast to the operand dtype (bf16 by default) at the API
    boundary; ideally the producer already emits that dtype.
    """
    dt = params["operand_dtype"]
    return _similarity_call(
        jnp.asarray(lvec, dt), jnp.asarray(rvec, dt),
        params["wh_m"], params["wh_a"], params["bh"],
        params["wp_t"], params["bp"],
        num_classes=params["num_classes"], block_b=block_b)


def _reference(lvec, rvec, wh_weight, wh_bias, wp_weight, wp_bias):
    mult = lvec * rvec
    absd = jnp.abs(lvec - rvec)
    vec = jnp.concatenate([mult, absd], axis=1)
    h = jax.nn.sigmoid(vec @ wh_weight.T + wh_bias)
    logits = h @ wp_weight.T + wp_bias
    return jax.nn.log_softmax(logits, axis=1)


if __name__ == "__main__":
    mem_dim, hidden_dim, num_classes = 32, 32, 5
    batch = 8

    key = jax.random.PRNGKey(0)
    k1, k2, k3, k4, k5, k6, k7, k8 = jax.random.split(key, 8)

    lvec = jax.random.normal(k1, (batch, mem_dim), dtype=jnp.float32)
    rvec = jax.random.normal(k2, (batch, mem_dim), dtype=jnp.float32)

    # nn.Linear shapes: weight=(out, in), bias=(out,)
    wh_weight = 0.1 * jax.random.normal(k3, (hidden_dim, 2 * mem_dim), dtype=jnp.float32)
    wh_bias = 0.1 * jax.random.normal(k4, (hidden_dim,), dtype=jnp.float32)
    wp_weight = 0.1 * jax.random.normal(k5, (num_classes, hidden_dim), dtype=jnp.float32)
    wp_bias = 0.1 * jax.random.normal(k6, (num_classes,), dtype=jnp.float32)

    ref = _reference(lvec, rvec, wh_weight, wh_bias, wp_weight, wp_bias)

    # --- Exactness check with f32 operands (same math path, tight tolerance).
    params_f32 = prepare_similarity_params(
        wh_weight, wh_bias, wp_weight, wp_bias, operand_dtype=jnp.float32)
    out_f32 = jax.block_until_ready(similarity_forward(lvec, rvec, params_f32))
    assert out_f32.shape == (batch, num_classes)
    assert jnp.allclose(out_f32, ref, atol=1e-5, rtol=1e-5)

    # --- Default (perf) path: bf16 matmul operands, f32 accumulation/activations.
    params = prepare_similarity_params(wh_weight, wh_bias, wp_weight, wp_bias)
    out = jax.block_until_ready(similarity_forward(lvec, rvec, params))
    assert out.shape == (batch, num_classes)
    assert jnp.allclose(out, ref, atol=3e-2, rtol=0)

    # --- Larger, non-multiple batch to exercise the batch grid + ragged last block.
    big_b = 300
    lvec_b = jax.random.normal(k7, (big_b, mem_dim), dtype=jnp.float32)
    rvec_b = jax.random.normal(k8, (big_b, mem_dim), dtype=jnp.float32)
    out_b = jax.block_until_ready(
        similarity_forward(lvec_b, rvec_b, params, block_b=128))
    ref_b = _reference(lvec_b, rvec_b, wh_weight, wh_bias, wp_weight, wp_bias)
    assert out_b.shape == (big_b, num_classes)
    assert jnp.allclose(out_b, ref_b, atol=3e-2, rtol=0)

    print("KERNEL_OK")
</pallas_src>

<mosaic_0001>
module attributes {stable_mosaic.version = 11 : i64} {
  func.func @_similarity_kernel(%arg0: i32, %arg1: memref<8x32xf32, #tpu.memory_space<vmem>>, %arg2: memref<8x32xf32, #tpu.memory_space<vmem>>, %arg3: memref<32x32xf32, #tpu.memory_space<vmem>>, %arg4: memref<32x32xf32, #tpu.memory_space<vmem>>, %arg5: memref<1x32xf32, #tpu.memory_space<vmem>>, %arg6: memref<32x128xf32, #tpu.memory_space<vmem>>, %arg7: memref<1x128xf32, #tpu.memory_space<vmem>>, %arg8: memref<8x5xf32, #tpu.memory_space<vmem>>) attributes {dimension_semantics = [#tpu.dimension_semantics<parallel>], iteration_bounds = array<i64: 1>, scalar_prefetch = 0 : i64, scratch_operands = 0 : i64, tpu.core_type = #tpu.core_type<tc>, window_params = [{transform_indices = @transform_0, window_bounds = array<i64: 8, 32>}, {transform_indices = @transform_1, window_bounds = array<i64: 8, 32>}, {pipeline_mode = #tpu.pipeline_mode<synchronous>, transform_indices = @transform_2, window_bounds = array<i64: 32, 32>}, {pipeline_mode = #tpu.pipeline_mode<synchronous>, transform_indices = @transform_3, window_bounds = array<i64: 32, 32>}, {pipeline_mode = #tpu.pipeline_mode<synchronous>, transform_indices = @transform_4, window_bounds = array<i64: 1, 32>}, {pipeline_mode = #tpu.pipeline_mode<synchronous>, transform_indices = @transform_5, window_bounds = array<i64: 32, 128>}, {pipeline_mode = #tpu.pipeline_mode<synchronous>, transform_indices = @transform_6, window_bounds = array<i64: 1, 128>}, {transform_indices = @transform_7, window_bounds = array<i64: 8, 5>}]} {
    %c0 = arith.constant 0 : index
    %c0_0 = arith.constant 0 : index
    %0 = vector.load %arg1[%c0, %c0_0] : memref<8x32xf32, #tpu.memory_space<vmem>>, vector<8x32xf32>
    %c0_1 = arith.constant 0 : index
    %c0_2 = arith.constant 0 : index
    %1 = vector.load %arg2[%c0_1, %c0_2] : memref<8x32xf32, #tpu.memory_space<vmem>>, vector<8x32xf32>
    %2 = arith.mulf %0, %1 : vector<8x32xf32>
    %3 = arith.subf %0, %1 : vector<8x32xf32>
    %4 = math.absf %3 : vector<8x32xf32>
    %c0_3 = arith.constant 0 : index
    %c0_4 = arith.constant 0 : index
    %5 = vector.load %arg3[%c0_3, %c0_4] : memref<32x32xf32, #tpu.memory_space<vmem>>, vector<32x32xf32>
    %cst = arith.constant dense<0.000000e+00> : vector<8x32xf32>
    %6 = tpu.matmul %2, %5, %cst {dimension_numbers = #tpu.dot_dimension_numbers<[1], [0], [0], [1], [0, 0, 1, 1], [], []>} : vector<8x32xf32>, vector<32x32xf32>, vector<8x32xf32> -> vector<8x32xf32>
    %c0_5 = arith.constant 0 : index
    %c0_6 = arith.constant 0 : index
    %7 = vector.load %arg4[%c0_5, %c0_6] : memref<32x32xf32, #tpu.memory_space<vmem>>, vector<32x32xf32>
    %cst_7 = arith.constant dense<0.000000e+00> : vector<8x32xf32>
    %8 = tpu.matmul %4, %7, %cst_7 {dimension_numbers = #tpu.dot_dimension_numbers<[1], [0], [0], [1], [0, 0, 1, 1], [], []>} : vector<8x32xf32>, vector<32x32xf32>, vector<8x32xf32> -> vector<8x32xf32>
    %9 = arith.addf %6, %8 : vector<8x32xf32>
    %c0_8 = arith.constant 0 : index
    %c0_9 = arith.constant 0 : index
    %10 = vector.load %arg5[%c0_8, %c0_9] : memref<1x32xf32, #tpu.memory_space<vmem>>, vector<1x32xf32>
    %11 = vector.broadcast %10 : vector<1x32xf32> to vector<8x32xf32>
    %12 = arith.addf %9, %11 : vector<8x32xf32>
    %13 = arith.negf %12 : vector<8x32xf32>
    %14 = math.exp %13 : vector<8x32xf32>
    %cst_10 = arith.constant 1.000000e+00 : f32
    %15 = vector.broadcast %cst_10 : f32 to vector<8x32xf32>
    %16 = arith.addf %15, %14 : vector<8x32xf32>
    %17 = arith.divf %15, %16 : vector<8x32xf32>
    %c0_11 = arith.constant 0 : index
    %c0_12 = arith.constant 0 : index
    %18 = vector.load %arg6[%c0_11, %c0_12] : memref<32x128xf32, #tpu.memory_space<vmem>>, vector<32x128xf32>
    %cst_13 = arith.constant dense<0.000000e+00> : vector<8x128xf32>
    %19 = tpu.matmul %17, %18, %cst_13 {dimension_numbers = #tpu.dot_dimension_numbers<[1], [0], [0], [1], [0, 0, 1, 1], [], []>} : vector<8x32xf32>, vector<32x128xf32>, vector<8x128xf32> -> vector<8x128xf32>
    %c0_14 = arith.constant 0 : index
    %c0_15 = arith.constant 0 : index
    %20 = vector.load %arg7[%c0_14, %c0_15] : memref<1x128xf32, #tpu.memory_space<vmem>>, vector<1x128xf32>
    %21 = vector.broadcast %20 : vector<1x128xf32> to vector<8x128xf32>
    %22 = arith.addf %19, %21 : vector<8x128xf32>
    %cst_16 = arith.constant dense<0xFF800000> : vector<8xf32>
    %23 = vector.multi_reduction <maximumf>, %22, %cst_16 [1] : vector<8x128xf32> to vector<8xf32>
    %24 = vector.shape_cast %23 : vector<8xf32> to vector<8x1xf32>
    %25 = vector.broadcast %24 : vector<8x1xf32> to vector<8x128xf32>
    %26 = arith.subf %22, %25 : vector<8x128xf32>
    %27 = math.exp %26 : vector<8x128xf32>
    %cst_17 = arith.constant dense<0.000000e+00> : vector<8xf32>
    %28 = vector.multi_reduction <add>, %27, %cst_17 [1] : vector<8x128xf32> to vector<8xf32>
    %29 = vector.shape_cast %28 : vector<8xf32> to vector<8x1xf32>
    %30 = math.log %29 : vector<8x1xf32>
    %31 = vector.broadcast %30 : vector<8x1xf32> to vector<8x128xf32>
    %32 = arith.subf %26, %31 : vector<8x128xf32>
    %33 = vector.extract_strided_slice %32 {offsets = [0, 0], sizes = [8, 5], strides = [1, 1]} : vector<8x128xf32> to vector<8x5xf32>
    %c0_18 = arith.constant 0 : index
    %c0_19 = arith.constant 0 : index
    %34 = vector.load %arg8[%c0_18, %c0_19] : memref<8x5xf32, #tpu.memory_space<vmem>>, vector<8x5xf32>
    tpu.vector_store %arg8[%c0_18, %c0_19], %33 {strides = array<i32>} : memref<8x5xf32, #tpu.memory_space<vmem>>, vector<8x5xf32>,
    return
  }
  func.func @transform_0(%arg0: i32) -> (i32, i32) {
    %c0_i32 = arith.constant 0 : i32
    %c0_i32_0 = arith.constant 0 : i32
    return %arg0, %c0_i32 : i32, i32
  }
  func.func @transform_1(%arg0: i32) -> (i32, i32) {
    %c0_i32 = arith.constant 0 : i32
    %c0_i32_0 = arith.constant 0 : i32
    return %arg0, %c0_i32 : i32, i32
  }
  func.func @transform_2(%arg0: i32) -> (i32, i32) {
    %c0_i32 = arith.constant 0 : i32
    %c0_i32_0 = arith.constant 0 : i32
    %c0_i32_1 = arith.constant 0 : i32
    return %c0_i32, %c0_i32_0 : i32, i32
  }
  func.func @transform_3(%arg0: i32) -> (i32, i32) {
    %c0_i32 = arith.constant 0 : i32
    %c0_i32_0 = arith.constant 0 : i32
    %c0_i32_1 = arith.constant 0 : i32
    return %c0_i32, %c0_i32_0 : i32, i32
  }
  func.func @transform_4(%arg0: i32) -> (i32, i32) {
    %c0_i32 = arith.constant 0 : i32
    %c0_i32_0 = arith.constant 0 : i32
    %c0_i32_1 = arith.constant 0 : i32
    return %c0_i32, %c0_i32_0 : i32, i32
  }
  func.func @transform_5(%arg0: i32) -> (i32, i32) {
    %c0_i32 = arith.constant 0 : i32
    %c0_i32_0 = arith.constant 0 : i32
    %c0_i32_1 = arith.constant 0 : i32
    return %c0_i32, %c0_i32_0 : i32, i32
  }
  func.func @transform_6(%arg0: i32) -> (i32, i32) {
    %c0_i32 = arith.constant 0 : i32
    %c0_i32_0 = arith.constant 0 : i32
    %c0_i32_1 = arith.constant 0 : i32
    return %c0_i32, %c0_i32_0 : i32, i32
  }
  func.func @transform_7(%arg0: i32) -> (i32, i32) {
    %c0_i32 = arith.constant 0 : i32
    %c0_i32_0 = arith.constant 0 : i32
    return %arg0, %c0_i32 : i32, i32
  }
}

</mosaic_0001>

<bundles_post_ra>
// kernel: _similarity_call.1
= control target key start
LH: loop header
LB: loop body
LE: loop exit
PB: predicated region body
PF: predicated region fallthrough
CT: control target
= control target key end

     0   :  { %12 = vsyncpa [#allocation3], 0  ;;  %s496_s0 = inlined_call_operand.hbm [shape: f32[8,32], index: 0, kind: input, shape index: {}]   ;;  %s497_s1 = inlined_call_operand.hbm [shape: f32[8,32], index: 1, kind: input, shape index: {}]   ;;  %s498_s2 = inlined_call_operand.hbm [shape: f32[32,32], index: 2, kind: input, shape index: {}]   ;;  %s499_s3 = inlined_call_operand.hbm [shape: f32[32,32], index: 3, kind: input, shape index: {}]   ;;  %s500_s4 = inlined_call_operand.vmem [shape: f32[1,32], index: 4, kind: input, shape index: {}]   ;;  %s501_s5 = inlined_call_operand.hbm [shape: f32[32,128], index: 5, kind: input, shape index: {}]   ;;  %s502_s6 = inlined_call_operand.vmem [shape: f32[1,128], index: 6, kind: input, shape index: {}]   ;;  %s503_s7 = inlined_call_operand.hbm [shape: f32[8,5], index: 7, kind: output, shape index: {}]  }
   0x1   :  { %13 = vsyncpa [#allocation6], 0 }
   0x2   :  { %14 = vsyncpa [#allocation9], 0  ;;  %s32_s26 = sshll.u32 %s497_s1, 4  ;;  %s33_s26 = int_to_ptr.hbm [resolvable:$true] %s32_s26 }
   0x3   :  { %15 = vsyncpa [#allocation4], 0  ;;  %s421_s27 = smov [#allocation5]   ;;  %s55_s8 = sshll.u32 %s499_s3, 4  ;;  %s56_s8 = int_to_ptr.hbm [resolvable:$true] %s55_s8 }
   0x4   :  { %s34_s28 = sshll.u32 %s421_s27, 4  ;;  %s422_s9 = smov [#allocation8]   ;;  %s35_s28 = int_to_ptr.vmem [resolvable:$true] %s34_s28 }
   0x5   :  { %37 = dma.hbm_to_vmem [thread:$0]  %s33_s26, 128, %s35_s28, [#allocation6]  }
   0x6   :  { %s57_s10 = sshll.u32 %s422_s9, 4  ;;  %s21_s13 = sshll.u32 %s496_s0, 4  ;;  %s58_s10 = int_to_ptr.vmem [resolvable:$true] %s57_s10  ;;  %s22_s13 = int_to_ptr.hbm [resolvable:$true] %s21_s13 }
   0x7   :  { %s423_s1 = smov 128   ;;  %s424_s14 = smov 8  }
   0x8   :  { %63 = dma.hbm_to_vmem [thread:$0]  %s56_s8, 512, %s58_s10, [#allocation9], %s423_s1, %s423_s1, %s424_s14  }
   0x9   :  { %s42_s17 = sshll.u32 %s498_s2, 4  ;;  %s425_s18 = smov [#allocation2]   ;;  %s43_s17 = int_to_ptr.hbm [resolvable:$true] %s42_s17 }
   0xa   :  { %s23_s19 = sshll.u32 %s425_s18, 4  ;;  %s426_s3 = smov [#allocation7]   ;;  %s24_s19 = int_to_ptr.vmem [resolvable:$true] %s23_s19 }
   0xb   :  { %26 = dma.hbm_to_vmem [thread:$0]  %s22_s13, 128, %s24_s19, [#allocation3]  }
   0xc   :  { %s44_s20 = sshll.u32 %s426_s3, 4  ;;  %s70_s0 = sshll.u32 %s501_s5, 4  ;;  %s45_s20 = int_to_ptr.vmem [resolvable:$true] %s44_s20  ;;  %s71_s0 = int_to_ptr.hbm [resolvable:$true] %s70_s0 }
   0xd   :  { %50 = dma.hbm_to_vmem [thread:$0]  %s43_s17, 512, %s45_s20, [#allocation6], %s423_s1, %s423_s1, %s424_s14  }
   0xe   :  { %s427_s23 = smov [#allocation10]  }
   0xf   :  { %s72_s24 = sshll.u32 %s427_s23, 4  ;;  %s73_s24 = int_to_ptr.vmem [resolvable:$true] %s72_s24 }
  0x10   :  { %78 = dma.hbm_to_vmem [thread:$0]  %s71_s0, 512, %s73_s24, [#allocation9], %s423_s1, %s423_s1, %s424_s14  }
  0x11   :  { %413 = dma.done.wait [#allocation3], 128  }
  0x12   :  { %414 = vsyncadd [#allocation3], 4294967168 }
  0x13   :  { %415 = dma.done.wait [#allocation6], 640  }
  0x14   :  { %416 = vsyncadd [#allocation6], 4294966656 }
  0x15   :  { %417 = dma.done.wait [#allocation9], 1024  }
  0x16   :  { %418 = vsyncadd [#allocation9], 4294966272  ;;  %v113_v0 = vld [vmem:[#allocation8 + $0x18] sm:$0xff]  ;;  %v112_v2 = vld [vmem:[#allocation8 + $0x10] sm:$0xff]  ;;  %vm114_vm0 = vcmask 261120   ;;  %s428_s26 = smov [#allocation11]  }
  0x17   :  { %v109_v1 = vld [vmem:[#allocation7 + $0x18] sm:$0xff]  ;;  %130 = vmatpush.msra.mxu0 %v113_v0  ;;  %v108_v3 = vld [vmem:[#allocation7 + $0x10] sm:$0xff]  ;;  %v111_v4 = vld [vmem:[#allocation8 + $0x8] sm:$0xff]  ;;  %s233_s27 = sshll.u32 %s428_s26, 4  ;;  %s235_s30 = sshll.u32 %s503_s7, 4  ;;  %vm226_vm5 = vcmask 39936   ;;  %s234_s27 = int_to_ptr.vmem [resolvable:$true] %s233_s27  ;;  %s236_s30 = int_to_ptr.hbm [resolvable:$true] %s235_s30 }
  0x18   :  { %153 = vmatpush.msra.mxu1 %v109_v1  ;;  %v107_v5 = vld [vmem:[#allocation7 + $0x8] sm:$0xff]  ;;  %v101_v6 = vld [vmem:[#allocation2] sm:$0xff]  ;;  %v102_v7 = vld [vmem:[#allocation5] sm:$0xff] }
  0x19   :  { %131 = vmatpush.msra.mxu0 %v112_v2  ;;  %v110_v8 = vld [vmem:[#allocation8] sm:$0xff]  ;;  %v104_v10 = vsub.f32 %v101_v6, %v102_v7  ;;  %v103_v11 = vmul.f32 %v102_v7, %v101_v6  ;;  %v188_v13 = vld [vmem:[#allocation10 + $0x18] sm:$0xff]  ;;  %v187_v14 = vld [vmem:[#allocation10 + $0x10] sm:$0xff] }
  0x1a   :  { %154 = vmatpush.msra.mxu1 %v108_v3  ;;  %v106_v9 = vld [vmem:[#allocation7] sm:$0xff]  ;;  %208 = vmatpush.msra.mxu2 %v188_v13  ;;  %v186_v15 = vld [vmem:[#allocation10 + $0x8] sm:$0xff]  ;;  %v259_v17 = vld [vmem:[%s500_s4] ss:$0 sm:$0xff] }
  0x1b   :  { %132 = vmatpush.msra.mxu0 %v111_v4  ;;  %v105_v12 = vand.u32 2147483647, %v104_v10  ;;  %v185_v16 = vld [vmem:[#allocation10] sm:$0xff]  ;;  %v260_v35 = vld [vmem:[%s502_s6] ss:$0 sm:$0xff] }
  0x1c   :  { %155 = vmatpush.msra.mxu1 %v107_v5  ;;  %209 = vmatpush.msra.mxu2 %v187_v14 }
  0x1d   :  { %133 = vmatpush.msra.mxu0 %v110_v8 }
  0x1e   :  { %156 = vmatpush.msra.mxu1 %v106_v9  ;;  %247 = vmatmul.msk.f32.vlgmr.msra.gmra.mxu0 %vm114_vm0, %v105_v12 }
  0x1f   :  { %248 = vmatmul.msk.f32.vlgmr.msra.gmra.mxu1 %vm114_vm0, %v103_v11  ;;  %210 = vmatpush.msra.mxu2 %v186_v15 }
  0x21   :  { %211 = vmatpush.msra.mxu2 %v185_v16 }
  0x9b   :  { %v135_v18 = vpop.f32.mrf.mxu0 }
  0x9c   :  { %v158_v19 = vpop.f32.mrf.mxu1 }
  0x9d   :  { %v159_v20 = vadd.f32 %v158_v19, %v135_v18 }
  0x9f   :  { %v165_v21 = vadd.f32 %v259_v17, %v159_v20 }
  0xa1   :  { %v249_v22 = vmul.f32 -1.442695, %v165_v21 }
  0xa3   :  { %261 = vpow2.f32 %v249_v22 }
  0xa9   :  { %v262_v23 = vpop.eup %261 }
  0xaa   :  { %v169_v24 = vadd.f32 1.0, %v262_v23 }
  0xac   :  { %263 = vrcp.f32 %v169_v24  ;;  %v181_v28 = vand.u32 2147483648, %v169_v24  ;;  %v179_v30 = vand.u32 2147483647, %v169_v24  ;;  %vm175_vm2 = vweird.f32 %v169_v24 }
  0xae   :  { %v182_v32 = vor.u32 1.1754944e-38, %v181_v28  ;;  %vm180_vm4 = vcmp.eq.f32.partialorder %v179_v30, 8.507059e+37 }
  0xb2   :  { %v264_v25 = vpop.eup %263 }
  0xb3   :  { %v171_v26 = vmul.f32 %v264_v25, %v169_v24  ;;  %vm176_vm1 = vweird.f32 %v264_v25 }
  0xb4   :  { %vm177_vm3 = vmor %vm175_vm2, %vm176_vm1 }
  0xb5   :  { %v172_v27 = vsub.f32 1.0, %v171_v26 }
  0xb7   :  { %v173_v29 = vmul.f32 %v264_v25, %v172_v27 }
  0xb9   :  { %v174_v31 = vadd.f32 %v264_v25, %v173_v29 }
  0xbb   :  { %v178_v33 = vsel %vm177_vm3, %v264_v25, %v174_v31 }
  0xbc   :  { %v183_v34 = vsel %vm180_vm4, %v182_v32, %v178_v33 }
  0xbd   :  { %250 = vmatmul.msk.f32.vlgmr.msra.gmra.mxu2 %vm114_vm0, %v183_v34 }
 0x140   :  { %v213_v36 = vpop.f32.mrf.mxu2 }
 0x141   :  { %v214_v37 = vadd.f32 %v260_v35, %v213_v36 }
 0x143   :  { %216 = vmax.xlane.f32.xlu0 %v214_v37 }
 0x1b6   :  { %v217_v38 = vpop.xlane.xlu0 %216 }
 0x1b7   :  { %v218_v39 = vsub.f32 %v214_v37, %v217_v38 }
 0x1b9   :  { %v219_v40 = vmul.f32 1.442695, %v218_v39 }
 0x1bb   :  { %265 = vpow2.f32 %v219_v40 }
 0x1c1   :  { %v266_v41 = vpop.eup %265 }
 0x1c2   :  { %221 = vadd.xlane.f32.xlu0 %v266_v41 }
 0x235   :  { %v222_v42 = vpop.xlane.xlu0 %221 }
 0x236   :  { %267 = vlog2.f32 %v222_v42 }
 0x23c   :  { %v268_v43 = vpop.eup %267 }
 0x23d   :  { %v224_v44 = vmul.f32 0.6931472, %v268_v43 }
 0x23f   :  { %v225_v45 = vsub.f32 %v218_v39, %v224_v44 }
 0x241   :  { %227 = vst.msk [vmem:[#allocation11] sm:$0xff] %vm226_vm5, %v225_v45 }
 0x242   :  { %238 = dma.vmem_to_hbm [thread:$0]  %s234_s27, 128, %s236_s30, [#allocation4]  }
 0x243   :  { %419 = dma.done.wait [#allocation4], 128  }
 0x244   :  { %420 = vsyncadd [#allocation4], 4294967168 }
 0x245   :  { %243 = vsyncpa [#allocation3], 1 }
 0x246   :  { %244 = vsyncpa [#allocation6], 1 }
 0x247   :  { %245 = vsyncpa [#allocation9], 1 }
 0x248   :  { %246 = vsyncpa [#allocation4], 1 }

</bundles_post_ra>
